<compile_context>
chip_gen: v7x
topology: tpu7x:2x2x1
jax: 0.10.0
libtpu: 0.0.40
codegen_flags: <defaults>
</compile_context>

<pallas_src>
import math
import functools

import jax
import jax.numpy as jnp
from jax.experimental import pallas as pl
from jax.experimental.pallas import tpu as pltpu


def _round_up(v, m):
    return ((v + m - 1) // m) * m


def _modfc_kernel(x_ref, wt_ref, style_ref, bias_ref, o_ref, *,
                  eps, demodulate, negative_slope):
    # x_ref:     (1, TILE_N, in_c)   current (batch, N-tile) slab
    # wt_ref:    (in_c, O_pad)       pre-scaled, pre-transposed weight (grid-invariant)
    # style_ref: (1, 1, in_c)        style vector for this batch element
    # bias_ref:  (1, O_pad)          bias row (shared)
    # o_ref:     (1, TILE_N, O_pad)
    x = x_ref[0]                                        # (TILE_N, in_c)
    wt = wt_ref[...]                                    # (in_c, O_pad)
    s32 = style_ref[0].astype(jnp.float32) + 1.0        # (1, in_c)

    # Modulate the input instead of the weight (exact for a 1x1 conv).
    x_mod = x * s32.astype(x.dtype)                     # broadcast over rows (VPU)

    # MXU matmul, f32 accumulation, native-dtype operands (bf16-friendly).
    acc = jnp.dot(x_mod, wt, preferred_element_type=jnp.float32)   # (TILE_N, O_pad)

    if demodulate:
        # demod[o] = rsqrt( sum_i (scale*W[o,i]*s[i])^2 + eps )
        #          = rsqrt( (s*s) @ (Wt*Wt) + eps )   -- no transposes needed.
        wt32 = wt.astype(jnp.float32)
        d_sq = jnp.dot(s32 * s32, wt32 * wt32,
                       preferred_element_type=jnp.float32)         # (1, O_pad)
        acc = acc * jax.lax.rsqrt(d_sq + eps)                       # EUP rsqrt, row-broadcast

    out = acc + bias_ref[...].astype(jnp.float32)                   # (1, O_pad) broadcast

    if negative_slope is not None:                                  # optional LeakyReLU(0.2)
        out = jnp.where(out >= 0.0, out, out * negative_slope)

    o_ref[0] = out.astype(o_ref.dtype)


def modulated_fc_conv(x, style, weight, bias, *, demodulate=True, eps=1e-8,
                      activation=None, tile_n=512):
    """Modulated_FC_Conv forward (kernel_size=1, use_style_fc=False).

    x:      (B, in_c) | (B, N, in_c) | (B, in_c, H, W)
    style:  (B, in_c)
    weight: (out_c, in_c)     (the module's (1, out_c, in_c, 1, 1) parameter squeezed)
    bias:   (out_c,)          (the module's (1, out_c, 1, 1) parameter squeezed)
    """
    orig_ndim = x.ndim
    if x.ndim == 2:                                  # (b, c) -> (b, 1, c)
        x3 = x[:, None, :]
        spatial = None
    elif x.ndim == 3:                                # (b, n, c)
        x3 = x
        spatial = None
    elif x.ndim == 4:                                # (b, c, h, w) -> (b, h*w, c)
        b_, c_, h_, w_ = x.shape
        x3 = jnp.transpose(x, (0, 2, 3, 1)).reshape(b_, h_ * w_, c_)
        spatial = (h_, w_)
    else:
        raise ValueError(f"unsupported x.ndim={x.ndim}")

    B, N, in_c = x3.shape
    out_c = weight.shape[0]
    assert weight.shape == (out_c, in_c)
    assert style.shape == (B, in_c)
    scale = 1.0 / math.sqrt(in_c)                    # fan_in = in_c * 1 * 1

    # --- grid-invariant weight prep (hoisted out of the kernel): scale + transpose once.
    wt = (scale * weight.astype(x3.dtype)).T          # (in_c, out_c)
    bias_row = bias.reshape(1, out_c).astype(x3.dtype)

    # --- lane-dense output: pad out_c to a multiple of 128 (zeros -> exact zeros, sliced later).
    o_pad = _round_up(out_c, 128)
    if o_pad != out_c:
        wt = jnp.pad(wt, ((0, 0), (0, o_pad - out_c)))
        bias_row = jnp.pad(bias_row, ((0, 0), (0, o_pad - out_c)))

    # --- tile the N axis (sublane-aligned), pad N with zero rows if it doesn't divide.
    tile_n = max(8, min(int(tile_n), _round_up(N, 8)))
    n_pad = _round_up(N, tile_n)
    if n_pad != N:
        x3 = jnp.pad(x3, ((0, 0), (0, n_pad - N), (0, 0)))
    nt = n_pad // tile_n

    style3 = style.reshape(B, 1, in_c)

    kernel = functools.partial(
        _modfc_kernel,
        eps=float(eps),
        demodulate=bool(demodulate),
        negative_slope=(0.2 if activation is not None else None),
    )

    itemsize = jnp.dtype(x3.dtype).itemsize
    cost = pl.CostEstimate(
        flops=2 * B * n_pad * in_c * o_pad,
        transcendentals=B * nt * o_pad,                          # rsqrt per tile
        bytes_accessed=(B * n_pad * in_c + B * n_pad * o_pad) * itemsize
                       + wt.size * itemsize + style3.size * itemsize + bias_row.size * itemsize,
    )

    out = pl.pallas_call(
        kernel,
        out_shape=jax.ShapeDtypeStruct((B, n_pad, o_pad), x3.dtype),
        grid_spec=pltpu.PrefetchScalarGridSpec(
            num_scalar_prefetch=0,
            grid=(B, nt),
            in_specs=[
                pl.BlockSpec((1, tile_n, in_c), lambda b, j: (b, j, 0)),   # x tile
                pl.BlockSpec((in_c, o_pad),     lambda b, j: (0, 0)),       # weight (shared, invariant)
                pl.BlockSpec((1, 1, in_c),      lambda b, j: (b, 0, 0)),    # style (per batch)
                pl.BlockSpec((1, o_pad),        lambda b, j: (0, 0)),       # bias (shared)
            ],
            out_specs=pl.BlockSpec((1, tile_n, o_pad), lambda b, j: (b, j, 0)),
        ),
        compiler_params=pltpu.CompilerParams(
            dimension_semantics=("parallel", "parallel"),
        ),
        cost_estimate=cost,
    )(x3, wt, style3, bias_row)

    out = out[:, :N, :out_c]

    if orig_ndim == 2:
        out = out[:, 0, :]
    elif orig_ndim == 4:
        h_, w_ = spatial
        out = jnp.transpose(out.reshape(B, h_, w_, out_c), (0, 3, 1, 2))
    return out


def modulated_fc_conv_ref(x3, style, weight, bias, *, demodulate=True, eps=1e-8):
    """Pure-JAX reference mirroring the PyTorch forward (x3: (B, N, in_c))."""
    out_c, in_c = weight.shape
    scale = 1.0 / math.sqrt(in_c)
    s = style[:, None, :] + 1.0                               # (B, 1, in_c)
    w = scale * weight[None] * s                              # (B, out_c, in_c)
    if demodulate:
        demod = jax.lax.rsqrt(jnp.sum(w * w, axis=2) + eps)   # (B, out_c)
        w = w * demod[:, :, None]
    return jnp.einsum("bni,boi->bno", x3, w) + bias[None, None, :]


if __name__ == "__main__":
    key = jax.random.PRNGKey(0)
    B, N, in_c, out_c = 2, 1000, 16, 32
    k_x, k_s, k_w, k_b, k_4 = jax.random.split(key, 5)

    x = jax.random.normal(k_x, (B, N, in_c), dtype=jnp.float32)
    style = jax.random.normal(k_s, (B, in_c), dtype=jnp.float32)
    weight = jax.random.normal(k_w, (out_c, in_c), dtype=jnp.float32)     # module: randn(1,out_c,in_c,1,1)
    bias = 0.1 * jax.random.normal(k_b, (out_c,), dtype=jnp.float32)      # module inits zeros; nonzero to exercise the add

    # 3D (b, n, c) path — N not a multiple of the tile, out_c < 128 (exercises padding/slicing).
    out = modulated_fc_conv(x, style, weight, bias, tile_n=256)
    out = jax.block_until_ready(out)
    ref = modulated_fc_conv_ref(x, style, weight, bias)
    assert out.shape == (B, N, out_c)
    err = float(jnp.max(jnp.abs(out - ref)))
    assert jnp.allclose(out, ref, atol=1e-3, rtol=1e-3), err

    # 4D (b, c, h, w) path.
    x4 = jax.random.normal(k_4, (B, in_c, 8, 8), dtype=jnp.float32)
    out4 = modulated_fc_conv(x4, style, weight, bias)
    out4 = jax.block_until_ready(out4)
    ref4 = modulated_fc_conv_ref(
        jnp.transpose(x4, (0, 2, 3, 1)).reshape(B, 64, in_c), style, weight, bias)
    ref4 = jnp.transpose(ref4.reshape(B, 8, 8, out_c), (0, 3, 1, 2))
    assert out4.shape == (B, out_c, 8, 8)
    err4 = float(jnp.max(jnp.abs(out4 - ref4)))
    assert jnp.allclose(out4, ref4, atol=1e-3, rtol=1e-3), err4

    print("KERNEL_OK")
</pallas_src>

<mosaic_0001>
module attributes {stable_mosaic.version = 11 : i64} {
  func.func @_modfc_kernel(%arg0: i32, %arg1: i32, %arg2: memref<1x256x16xf32, #tpu.memory_space<vmem>>, %arg3: memref<16x128xf32, #tpu.memory_space<vmem>>, %arg4: memref<1x1x16xf32, #tpu.memory_space<vmem>>, %arg5: memref<1x128xf32, #tpu.memory_space<vmem>>, %arg6: memref<1x256x128xf32, #tpu.memory_space<vmem>>) attributes {dimension_semantics = [#tpu.dimension_semantics<parallel>, #tpu.dimension_semantics<parallel>], iteration_bounds = array<i64: 2, 4>, scalar_prefetch = 0 : i64, scratch_operands = 0 : i64, tpu.core_type = #tpu.core_type<tc>, window_params = [{transform_indices = @transform_0, window_bounds = array<i64: 1, 256, 16>}, {pipeline_mode = #tpu.pipeline_mode<synchronous>, transform_indices = @transform_1, window_bounds = array<i64: 16, 128>}, {transform_indices = @transform_2, window_bounds = array<i64: 1, 1, 16>}, {pipeline_mode = #tpu.pipeline_mode<synchronous>, transform_indices = @transform_3, window_bounds = array<i64: 1, 128>}, {transform_indices = @transform_4, window_bounds = array<i64: 1, 256, 128>}]} {
    %c0 = arith.constant 0 : index
    %c0_0 = arith.constant 0 : index
    %c0_1 = arith.constant 0 : index
    %0 = vector.load %arg2[%c0, %c0_0, %c0_1] : memref<1x256x16xf32, #tpu.memory_space<vmem>>, vector<1x256x16xf32>
    %1 = vector.shape_cast %0 : vector<1x256x16xf32> to vector<256x16xf32>
    %c0_2 = arith.constant 0 : index
    %c0_3 = arith.constant 0 : index
    %2 = vector.load %arg3[%c0_2, %c0_3] : memref<16x128xf32, #tpu.memory_space<vmem>>, vector<16x128xf32>
    %c0_4 = arith.constant 0 : index
    %c0_5 = arith.constant 0 : index
    %c0_6 = arith.constant 0 : index
    %3 = vector.load %arg4[%c0_4, %c0_5, %c0_6] : memref<1x1x16xf32, #tpu.memory_space<vmem>>, vector<1x1x16xf32>
    %4 = vector.shape_cast %3 : vector<1x1x16xf32> to vector<1x16xf32>
    %cst = arith.constant 1.000000e+00 : f32
    %5 = vector.broadcast %cst : f32 to vector<1x16xf32>
    %6 = arith.addf %4, %5 : vector<1x16xf32>
    %7 = vector.broadcast %6 : vector<1x16xf32> to vector<256x16xf32>
    %8 = arith.mulf %1, %7 : vector<256x16xf32>
    %cst_7 = arith.constant dense<0.000000e+00> : vector<256x128xf32>
    %9 = tpu.matmul %8, %2, %cst_7 {dimension_numbers = #tpu.dot_dimension_numbers<[1], [0], [0], [1], [0, 0, 1, 1], [], []>} : vector<256x16xf32>, vector<16x128xf32>, vector<256x128xf32> -> vector<256x128xf32>
    %10 = arith.mulf %6, %6 : vector<1x16xf32>
    %11 = arith.mulf %2, %2 : vector<16x128xf32>
    %cst_8 = arith.constant dense<0.000000e+00> : vector<1x128xf32>
    %12 = tpu.matmul %10, %11, %cst_8 {dimension_numbers = #tpu.dot_dimension_numbers<[1], [0], [0], [1], [0, 0, 1, 1], [], []>} : vector<1x16xf32>, vector<16x128xf32>, vector<1x128xf32> -> vector<1x128xf32>
    %cst_9 = arith.constant 9.99999993E-9 : f32
    %13 = vector.broadcast %cst_9 : f32 to vector<1x128xf32>
    %14 = arith.addf %12, %13 : vector<1x128xf32>
    %15 = math.rsqrt %14 : vector<1x128xf32>
    %16 = vector.broadcast %15 : vector<1x128xf32> to vector<256x128xf32>
    %17 = arith.mulf %9, %16 : vector<256x128xf32>
    %c0_10 = arith.constant 0 : index
    %c0_11 = arith.constant 0 : index
    %18 = vector.load %arg5[%c0_10, %c0_11] : memref<1x128xf32, #tpu.memory_space<vmem>>, vector<1x128xf32>
    %19 = vector.broadcast %18 : vector<1x128xf32> to vector<256x128xf32>
    %20 = arith.addf %17, %19 : vector<256x128xf32>
    %c0_12 = arith.constant 0 : index
    %c0_13 = arith.constant 0 : index
    %c0_14 = arith.constant 0 : index
    %21 = vector.load %arg6[%c0_12, %c0_13, %c0_14] : memref<1x256x128xf32, #tpu.memory_space<vmem>>, vector<1x256x128xf32>
    %22 = vector.shape_cast %21 : vector<1x256x128xf32> to vector<256x128xf32>
    %23 = vector.shape_cast %20 : vector<256x128xf32> to vector<1x256x128xf32>
    tpu.vector_store %arg6[%c0_12, %c0_13, %c0_14], %23 {strides = array<i32>} : memref<1x256x128xf32, #tpu.memory_space<vmem>>, vector<1x256x128xf32>,
    return
  }
  func.func @transform_0(%arg0: i32, %arg1: i32) -> (i32, i32, i32) {
    %c0_i32 = arith.constant 0 : i32
    %c0_i32_0 = arith.constant 0 : i32
    return %arg0, %arg1, %c0_i32 : i32, i32, i32
  }
  func.func @transform_1(%arg0: i32, %arg1: i32) -> (i32, i32) {
    %c0_i32 = arith.constant 0 : i32
    %c0_i32_0 = arith.constant 0 : i32
    %c0_i32_1 = arith.constant 0 : i32
    return %c0_i32, %c0_i32_0 : i32, i32
  }
  func.func @transform_2(%arg0: i32, %arg1: i32) -> (i32, i32, i32) {
    %c0_i32 = arith.constant 0 : i32
    %c0_i32_0 = arith.constant 0 : i32
    %c0_i32_1 = arith.constant 0 : i32
    return %arg0, %c0_i32, %c0_i32_0 : i32, i32, i32
  }
  func.func @transform_3(%arg0: i32, %arg1: i32) -> (i32, i32) {
    %c0_i32 = arith.constant 0 : i32
    %c0_i32_0 = arith.constant 0 : i32
    %c0_i32_1 = arith.constant 0 : i32
    return %c0_i32, %c0_i32_0 : i32, i32
  }
  func.func @transform_4(%arg0: i32, %arg1: i32) -> (i32, i32, i32) {
    %c0_i32 = arith.constant 0 : i32
    %c0_i32_0 = arith.constant 0 : i32
    return %arg0, %arg1, %c0_i32 : i32, i32, i32
  }
}

</mosaic_0001>

<bundles_post_ra>
// kernel: tpu_custom_call.1
= control target key start
LH: loop header
LB: loop body
LE: loop exit
PB: predicated region body
PF: predicated region fallthrough
CT: control target
= control target key end

     0   :  { %9 = vsyncpa [#allocation3], 0  ;;  %s1689_s0 = inlined_call_operand.vmem [shape: f32[2,1024,16], index: 0, kind: input, shape index: {}]   ;;  %s1690_s1 = inlined_call_operand.vmem [shape: f32[16,128], index: 1, kind: input, shape index: {}]   ;;  %s1691_s2 = inlined_call_operand.vmem [shape: f32[2,1,16], index: 2, kind: input, shape index: {}]   ;;  %s1692_s3 = inlined_call_operand.vmem [shape: f32[1,128], index: 3, kind: input, shape index: {}]   ;;  %s1693_s4 = inlined_call_operand.hbm [shape: f32[2,1024,128], index: 4, kind: output, shape index: {}]  }
   0x1   :  { %11 = vsyncpa [#allocation3 + $0x1], 0  ;;  %s1287_s15 = smov 0   ;;  %s1289_s16 = smov 0  }
   0x2   :  { %s1291_s17 = smov 0   ;;  %s1293_s18 = smov 0  }
   0x3   :  { %s1295_s19 = smov 0   ;;  %s1297_s20 = smov 0  }
   0x4   :  { %s1299_s21 = smov 0   ;;  %s1301_s22 = smov 0  }
   0x5 LB: > { %s928_s23 = sadd.s32 4294967295, %s1254_s22   ;;  %s929_s24 = sadd.s32 4294967294, %s1254_s22   ;;  %s1254_s22 = sphi %s1301_s22, %s17_s22   ;;  %s1250_s21 = sphi %s1299_s21, %s1702_s21   ;;  %s1246_s20 = sphi %s1297_s20, %s1701_s20   ;;  %s1242_s19 = sphi %s1295_s19, %s1700_s19   ;;  %s1238_s18 = sphi %s1293_s18, %s1699_s18   ;;  %s1234_s17 = sphi %s1291_s17, %s1698_s17   ;;  %s1230_s16 = sphi %s1289_s16, %s1697_s16   ;;  %s1226_s15 = sphi %s1287_s15, %s1696_s15  }
   0x6   : > { %s26_s25 = sadd.s32 1, %s1246_s20  ;;  %s29_s26 = sadd.s32 1, %s1250_s21 }
   0x7   : > { %p27_p0 = scmp.ge.s32.totalorder %s26_s25, 4  ;;  %p144_p1 = scmp.ne.s32.totalorder %s1234_s17, %s1230_s16 }
   0x8   : > { %p145_p2 = scmp.eq.s32.totalorder %s928_s23, 7  ;;  %p150_p5 = scmp.ne.s32.totalorder %s1230_s16, %s1226_s15 }
   0x9   : > { %s1704_s25 = smov (%p27_p0, %s26_s25), 0  ;;  %s1706_s26 = smov (!%p27_p0, %s29_s26), %s1250_s21 }
   0xa   : > { %s130_s27 = ssub.s32 %s1246_s20, %s1704_s25  ;;  %p1338_p3 = por %p145_p2, %p144_p1 }
   0xb   : > { %p31_p4 = scmp.ge.s32.totalorder %s1706_s26, 2  ;;  %p151_p6 = scmp.eq.s32.totalorder %s929_s24, 7 }
   0xc   : > { %p932_p7 = scmp.ge.s32.totalorder %s1254_s22, 1  ;;  %p194_p9 = scmp.lt.s32.totalorder %s1254_s22, 9 }
   0xd   : > { %s1708_s26 = smov (%p31_p4, %s1706_s26), 0  ;;  %p1347_p8 = por %p151_p6, %p150_p5 }
   0xe   : > { %s129_s30 = ssub.s32 %s1250_s21, %s1708_s26  ;;  %s134_s5 = sadd.s32 1, %s1234_s17 }
   0xf   : > { %s131_s6 = sor.u32 %s130_s27, %s129_s30  ;;  %p195_p10 = pnand %p932_p7, %p194_p9 }
  0x10   : > { %p132_p11 = scmp.eq.s32.totalorder %s131_s6, 0  ;;  %v273_v0 = vld [vmem:[%s1690_s1] sm:$0xff] (!%p195_p10)  ;;  %v274_v1 = vld [vmem:[%s1690_s1 + $0x8] sm:$0xff] (!%p195_p10)  ;;  %s1365_s12 = sshll.u32 (!%p195_p10), %s1238_s18, 5  ;;  %v278_v2 = vlaneseq (!%p195_p10)  ;;  %v1256_v7 = vmov (!%p195_p10), 0.0|0.0   ;;  %vm315_vm0 = vcmask (!%p195_p10), 130048  }
  0x11   : > { %198 = sbr.rel (%p195_p10) target bundleno = 329 (0x149), region = 36  ;;  %p228_p12 = scmp.lt.s32.totalorder (!%p195_p10), %s1242_s19, 1  ;;  %v1073_v3 = vpack.c.bf16 (!%p195_p10), %v274_v1, %v273_v0  ;;  %v638_v9 = vmul.f32 (!%p195_p10), %v273_v0, %v273_v0  ;;  %v639_v10 = vmul.f32 (!%p195_p10), %v274_v1, %v274_v1  ;;  %vm1257_vm1 = vmmov (!%p195_p10), 0  }
  0x12   : > { %s1356_s7 = scalar_select %p132_p11, %s1234_s17, %s134_s5  }
  0x13   : > { %p230_p13 = scmp.lt.s32.totalorder (!%p195_p10), %s1365_s12, 127  ;;  %v1370_v4 = vshrl.u32 (!%p195_p10), %v278_v2, 7  ;;  %1080 = vmatprep.subr.bf16.mxu1 (!%p195_p10), %v1073_v3  ;;  %1074 = vmatprep.subr.bf16.mxu0 (!%p195_p10), %v1073_v3  ;;  %v1078_v18 = vpack.c.bf16 (!%p195_p10), %v639_v10, %v638_v9  ;;  %s224_s10 = sand.u32 (!%p195_p10), 1, %s1230_s16  }
  0x14   : > { %1081 = vmatpush3.bf16.msra.mxu1 (!%p195_p10), %v1073_v3  ;;  %1076 = vmatpush3.bf16.msra.mxu0 (!%p195_p10), %v1073_v3  ;;  %s1517_s11 = sshll.u32 (!%p195_p10), %s224_s10, 8  ;;  %s1637_s6 = scalar_lea.sflag (!%p195_p10), [#allocation3], %s224_s10 }
  0x15   : > { %v280_v5 = vsub.s32 (!%p195_p10), 0, %v1370_v4  ;;  %1077 = vmatprep.subr.bf16.mxu1 (!%p195_p10), %v1256_v7  ;;  %s1557_s24 = scalar_lea.vmem (!%p195_p10), [#allocation2], %s1517_s11 }
  0x16   : > { %s837_s27 = sshll.u32 (!%p195_p10), %s1557_s24, 4  ;;  %s1625_s27 = int_to_ptr.vmem [resolvable:$true] %s837_s27 }
  0x17   : > { %s1160_s8 = scalar_lea.vmem (!%p195_p10), %s1625_s27, 4096 }
  0x18   : > { %s229_s13 = scalar_select %p228_p12, %s1242_s19, 1 }
  0x19   : > { %s231_s14 = scalar_select %p230_p13, %s1365_s12, 127 }
  0x1a   : > { %s935_s23 = sshll.u32 %s229_s13, 7  ;;  %s239_s30 = scalar_lea.vmem %s1691_s2, %s229_s13 }
  0x1b   : > { %s233_s18 = sadd.s32 %s935_s23, %s231_s14  ;;  %v275_v6 = vld [vmem:[%s239_s30] sm:$0x1]  ;;  %s973_s23 = sshll.u32 %s1242_s19, 7 }
  0x1c   : > { %s936_s5 = sshll.u32 %s233_s18, 3  ;;  %v1377_v8 = vadd.f32 1.0, %v275_v6  ;;  %s1550_s19 = sadd.s32 %s973_s23, %s1365_s12 }
  0x1d   : > { %s1382_s9 = scalar_lea.vmem %s1689_s0, %s936_s5  ;;  %s974_s12 = sshll.u32 %s1550_s19, 7 }
  0x1e   : > { %v259_v11 = vld [vmem:[%s1382_s9 + $0x90] sm:$0xff]  ;;  %v1388_v12 = vrot.slane %v1377_v8, %v280_v5  ;;  %v260_v13 = vld [vmem:[%s1382_s9 + $0x98] sm:$0xff]  ;;  %v261_v14 = vld [vmem:[%s1382_s9 + $0xa0] sm:$0xff]  ;;  %s1613_s5 = scalar_lea.hbm %s1693_s4, %s974_s12  ;;  %p1161_p0 = scmp.ne.s32.totalorder %s1625_s27, %s1160_s8 }
  0x1f   : > { %v241_v15 = vld [vmem:[%s1382_s9] sm:$0xff]  ;;  %v262_v20 = vld [vmem:[%s1382_s9 + $0xa8] sm:$0xff]  ;;  %v263_v22 = vld [vmem:[%s1382_s9 + $0xb0] sm:$0xff] }
  0x20   : > { %v301_v16 = vmul.f32 %v1388_v12, %v259_v11  ;;  %v302_v17 = vmul.f32 %v1388_v12, %v260_v13  ;;  %v303_v19 = vmul.f32 %v1388_v12, %v261_v14  ;;  %v242_v21 = vld [vmem:[%s1382_s9 + $0x8] sm:$0xff]  ;;  %v283_v23 = vmul.f32 %v1388_v12, %v241_v15  ;;  %v243_v25 = vld [vmem:[%s1382_s9 + $0x10] sm:$0xff]  ;;  %v244_v27 = vld [vmem:[%s1382_s9 + $0x18] sm:$0xff]  ;;  %p1162_p1 = pnand %p1161_p0, %p1338_p3 }
  0x21   : > { %v284_v24 = vmul.f32 %v1388_v12, %v242_v21  ;;  %v285_v26 = vmul.f32 %v1388_v12, %v243_v25  ;;  %v304_v28 = vmul.f32 %v1388_v12, %v262_v20  ;;  %v245_v29 = vld [vmem:[%s1382_s9 + $0x20] sm:$0xff]  ;;  %v305_v30 = vmul.f32 %v1388_v12, %v263_v22  ;;  %v264_v31 = vld [vmem:[%s1382_s9 + $0xb8] sm:$0xff]  ;;  %v246_v35 = vld [vmem:[%s1382_s9 + $0x28] sm:$0xff] }
  0x22   : > { %1045 = vmatprep.mubr.msk.f32.mxu1 %vm315_vm0, %v301_v16  ;;  %1018 = vmatprep.mubr.msk.f32.mxu0 %vm315_vm0, %v283_v23  ;;  %v265_v32 = vld [vmem:[%s1382_s9 + $0xc0] sm:$0xff]  ;;  %v286_v33 = vmul.f32 %v1388_v12, %v244_v27  ;;  %v287_v34 = vmul.f32 %v1388_v12, %v245_v29  ;;  %v306_v36 = vmul.f32 %v1388_v12, %v264_v31  ;;  %v247_v37 = vld [vmem:[%s1382_s9 + $0x30] sm:$0xff]  ;;  %v266_v39 = vld [vmem:[%s1382_s9 + $0xc8] sm:$0xff]  ;;  %v1258_v14 = vmov 0.0   ;;  %p1163_p2 = pneg %p1162_p1 }
  0x23   : > { %1046 = vmatmul.mubr.msk.f32.vlgmr.msra.gmra.mrb[0].mxu1 %vm315_vm0, %v302_v17  ;;  %1019 = vmatmul.mubr.msk.f32.vlgmr.msra.gmra.mrb[0].mxu0 %vm315_vm0, %v284_v24  ;;  %v307_v38 = vmul.f32 %v1388_v12, %v265_v32  ;;  %v267_v40 = vld [vmem:[%s1382_s9 + $0xd0] sm:$0xff]  ;;  %v288_v41 = vmul.f32 %v1388_v12, %v246_v35  ;;  %v289_v42 = vmul.f32 %v1388_v12, %v247_v37  ;;  %v248_v43 = vld [vmem:[%s1382_s9 + $0x38] sm:$0xff]  ;;  %v249_v45 = vld [vmem:[%s1382_s9 + $0x40] sm:$0xff] }
  0x24   : > { %1079 = vmatpush3.bf16.msra.mxu1 %v1078_v18  ;;  %1048 = vmatprep.mubr.msk.f32.mxu1 %vm315_vm0, %v303_v19  ;;  %v308_v44 = vmul.f32 %v1388_v12, %v266_v39  ;;  %v309_v46 = vmul.f32 %v1388_v12, %v267_v40  ;;  %v268_v47 = vld [vmem:[%s1382_s9 + $0xd8] sm:$0xff]  ;;  %v269_v48 = vld [vmem:[%s1382_s9 + $0xe0] sm:$0xff]  ;;  %v290_v49 = vmul.f32 %v1388_v12, %v248_v43  ;;  %v250_v51 = vld [vmem:[%s1382_s9 + $0x48] sm:$0xff] }
  0x25   : > { %1021 = vmatprep.mubr.msk.f32.mxu0 %vm315_vm0, %v285_v26  ;;  %v291_v50 = vmul.f32 %v1388_v12, %v249_v45  ;;  %v310_v52 = vmul.f32 %v1388_v12, %v268_v47  ;;  %v251_v53 = vld [vmem:[%s1382_s9 + $0x50] sm:$0xff]  ;;  %v311_v54 = vmul.f32 %v1388_v12, %v269_v48  ;;  %v270_v55 = vld [vmem:[%s1382_s9 + $0xe8] sm:$0xff]  ;;  %v292_v57 = vmul.f32 %v1388_v12, %v250_v51  ;;  %v252_v59 = vld [vmem:[%s1382_s9 + $0x58] sm:$0xff] }
  0x26   : > { %v271_v56 = vld [vmem:[%s1382_s9 + $0xf0] sm:$0xff]  ;;  %v293_v58 = vmul.f32 %v1388_v12, %v251_v53  ;;  %v312_v60 = vmul.f32 %v1388_v12, %v270_v55  ;;  %v253_v61 = vld [vmem:[%s1382_s9 + $0x60] sm:$0xff]  ;;  %v272_v63 = vld [vmem:[%s1382_s9 + $0xf8] sm:$0xff]  ;;  %v294_v0 = vmul.f32 %v1388_v12, %v252_v59  ;;  %v637_v11 = vmul.f32 %v1377_v8, %v1377_v8 }
  0x27   : > { %1049 = vmatmul.mubr.msk.f32.gmra.mrb[2].mxu1 %vm315_vm0, %v304_v28  ;;  %1022 = vmatmul.mubr.msk.f32.gmra.mrb[2].mxu0 %vm315_vm0, %v286_v33  ;;  %v313_v62 = vmul.f32 %v1388_v12, %v271_v56  ;;  %v295_v1 = vmul.f32 %v1388_v12, %v253_v61  ;;  %v254_v2 = vld [vmem:[%s1382_s9 + $0x68] sm:$0xff]  ;;  %v314_v3 = vmul.f32 %v1388_v12, %v272_v63  ;;  %v255_v6 = vld [vmem:[%s1382_s9 + $0x70] sm:$0xff]  ;;  %v256_v10 = vld [vmem:[%s1382_s9 + $0x78] sm:$0xff] }
  0x28   : > { %1051 = vmatprep.mubr.msk.f32.mxu1 %vm315_vm0, %v305_v30  ;;  %1024 = vmatprep.mubr.msk.f32.mxu0 %vm315_vm0, %v287_v34  ;;  %v296_v7 = vmul.f32 %v1388_v12, %v254_v2  ;;  %v297_v9 = vmul.f32 %v1388_v12, %v255_v6  ;;  %v257_v13 = vld [vmem:[%s1382_s9 + $0x80] sm:$0xff]  ;;  %v298_v15 = vmul.f32 %v1388_v12, %v256_v10  ;;  %v258_v17 = vld [vmem:[%s1382_s9 + $0x88] sm:$0xff]  ;;  %s1259_s9 = smov [#allocation2]  }
  0x29   : > { %v299_v16 = vmul.f32 %v1388_v12, %v257_v13  ;;  %v300_v18 = vmul.f32 %v1388_v12, %v258_v17  ;;  %s1164_s11 = sshll.u32 %s1259_s9, 4  ;;  %s1165_s11 = int_to_ptr.vmem [resolvable:$false] %s1164_s11 }
  0x2a   : > { %s1166_s13 = scalar_lea.vmem %s1165_s11, 8192  ;;  %p1167_p4 = scmp.lt.s32.totalorder %s1625_s27, %s1165_s11 }
  0x2b   : > { %1052 = vmatmul.mubr.msk.f32.gmra.mrb[4].mxu1 %vm315_vm0, %v306_v36  ;;  %1025 = vmatmul.mubr.msk.f32.gmra.mrb[4].mxu0 %vm315_vm0, %v288_v41  ;;  %p1168_p5 = scmp.lt.s32.totalorder %s1166_s13, %s1160_s8 }
  0x2c   : > { %1054 = vmatprep.mubr.msk.f32.mxu1 %vm315_vm0, %v307_v38  ;;  %1027 = vmatprep.mubr.msk.f32.mxu0 %vm315_vm0, %v289_v42 }
  0x2d   : > { %p1169_p6 = por %p1168_p5, %p1167_p4 }
  0x2f   : > { %1055 = vmatmul.mubr.msk.f32.gmra.mrb[6].mxu1 %vm315_vm0, %v308_v44  ;;  %1028 = vmatmul.mubr.msk.f32.gmra.mrb[6].mxu0 %vm315_vm0, %v290_v49  ;;  %p1170_p7 = pnand %p1169_p6, %p1163_p2 }
  0x30   : > { %1057 = vmatprep.mubr.msk.f32.mxu1 %vm315_vm0, %v309_v46  ;;  %1030 = vmatprep.mubr.msk.f32.mxu0 %vm315_vm0, %v291_v50 }
  0x33   : > { %1058 = vmatmul.mubr.msk.f32.gmra.mrb[8].mxu1 %vm315_vm0, %v310_v52  ;;  %1031 = vmatmul.mubr.msk.f32.gmra.mrb[8].mxu0 %vm315_vm0, %v292_v57 }
  0x34   : > { %1060 = vmatprep.mubr.msk.f32.mxu1 %vm315_vm0, %v311_v54  ;;  %1033 = vmatprep.mubr.msk.f32.mxu0 %vm315_vm0, %v293_v58 }
  0x37   : > { %1061 = vmatmul.mubr.msk.f32.gmra.mrb[10].mxu1 %vm315_vm0, %v312_v60  ;;  %1034 = vmatmul.mubr.msk.f32.gmra.mrb[10].mxu0 %vm315_vm0, %v294_v0  ;;  %v1526_v0 = vld [vmem:[%s1692_s3] ss:$0 sm:$0xff] }
  0x38   : > { %1063 = vmatprep.mubr.msk.f32.mxu1 %vm315_vm0, %v313_v62  ;;  %1036 = vmatprep.mubr.msk.f32.mxu0 %vm315_vm0, %v295_v1 }
  0x3b   : > { %1064 = vmatmul.mubr.msk.f32.gmra.mrb[12].mxu1 %vm315_vm0, %v314_v3  ;;  %1037 = vmatmul.mubr.msk.f32.gmra.mrb[12].mxu0 %vm315_vm0, %v296_v7 }
  0x3c   : > { %1070 = vmatprep.mubr.msk.f32.mxu1 %vm1257_vm1, %v1258_v14  ;;  %1039 = vmatprep.mubr.msk.f32.mxu0 %vm315_vm0, %v297_v9 }
  0x3f   : > { %1071 = vmatmul.mubr.msk.f32.vlgmr.msra.gmra.mrb[14].mxu1 %vm315_vm0, %v637_v11  ;;  %1040 = vmatmul.mubr.msk.f32.gmra.mrb[14].mxu0 %vm315_vm0, %v298_v15 }
  0x40   : > { %1042 = vmatprep.mubr.msk.f32.mxu0 %vm315_vm0, %v299_v16 }
  0x43   : > { %1043 = vmatmul.mubr.msk.f32.gmra.mrb[16].mxu0 %vm315_vm0, %v300_v18 }
  0xf6   : > { %v1047_v8 = vpop.f32.mrb[0].mxu1  ;;  %v1020_v20 = vpop.f32.mrb[0].mxu0 }
  0xf7   : > { %v568_v19 = vpop.f32.mrb[1].mxu1  ;;  %v478_v21 = vpop.f32.mrb[1].mxu0 }
  0xfa   : > { %v1050_v22 = vpop.f32.mrb[2].mxu1  ;;  %v1023_v24 = vpop.f32.mrb[2].mxu0 }
  0xfb   : > { %v578_v23 = vpop.f32.mrb[3].mxu1  ;;  %v488_v25 = vpop.f32.mrb[3].mxu0 }
  0xfe   : > { %v1053_v26 = vpop.f32.mrb[4].mxu1  ;;  %v1026_v28 = vpop.f32.mrb[4].mxu0 }
  0xff   : > { %v588_v27 = vpop.f32.mrb[5].mxu1  ;;  %v498_v29 = vpop.f32.mrb[5].mxu0 }
 0x102   : > { %v1056_v30 = vpop.f32.mrb[6].mxu1  ;;  %v1029_v32 = vpop.f32.mrb[6].mxu0 }
 0x103   : > { %v598_v31 = vpop.f32.mrb[7].mxu1  ;;  %v508_v12 = vpop.f32.mrb[7].mxu0 }
 0x106   : > { %v1059_v33 = vpop.f32.mrb[8].mxu1  ;;  %v1032_v35 = vpop.f32.mrb[8].mxu0 }
 0x107   : > { %v608_v34 = vpop.f32.mrb[9].mxu1  ;;  %v518_v36 = vpop.f32.mrb[9].mxu0 }
 0x10a   : > { %v1062_v37 = vpop.f32.mrb[10].mxu1  ;;  %v1035_v39 = vpop.f32.mrb[10].mxu0 }
 0x10b   : > { %v618_v38 = vpop.f32.mrb[11].mxu1  ;;  %v1488_v40 = vpop.f32.mrb[11].mxu0 }
 0x10e   : > { %v1065_v41 = vpop.f32.mrb[12].mxu1  ;;  %v1490_v43 = vpop.f32.mrb[12].mxu0 }
 0x10f   : > { %v628_v42 = vpop.f32.mrb[13].mxu1  ;;  %v1492_v44 = vpop.f32.mrb[13].mxu0 }
 0x112   : > { %v709_v45 = vpop.f32.mrb[14].mxu1  ;;  %v1494_v48 = vpop.f32.mrb[14].mxu0 }
 0x113   : > { %v710_v46 = vadd.f32 1e-08, %v709_v45  ;;  %v1072_v47 = vpop.f32.mrb[15].mxu1  ;;  %v1496_v49 = vpop.f32.mrb[15].mxu0 }
 0x115   : > { %1158 = vrsqrt.f32 %v710_v46 }
 0x116   : > { %v1498_v50 = vpop.f32.mrb[16].mxu0 }
 0x117   : > { %v1500_v51 = vpop.f32.mrb[17].mxu0 }
 0x11f   : > { %v1159_v52 = vpop.eup %1158 }
 0x120   : > { %v1504_v53 = vrot.slane %v1159_v52, %v280_v5 }
 0x122   : > { %v718_v54 = vmul.f32 %v1504_v53, %v478_v21  ;;  %v719_v55 = vmul.f32 %v1020_v20, %v1504_v53  ;;  %v720_v56 = vmul.f32 %v1504_v53, %v488_v25  ;;  %v721_v57 = vmul.f32 %v1023_v24, %v1504_v53 }
 0x123   : > { %v722_v58 = vmul.f32 %v1504_v53, %v498_v29  ;;  %v723_v59 = vmul.f32 %v1026_v28, %v1504_v53  ;;  %v724_v60 = vmul.f32 %v1504_v53, %v508_v12  ;;  %v725_v4 = vmul.f32 %v1029_v32, %v1504_v53 }
 0x124   : > { %v726_v5 = vmul.f32 %v1504_v53, %v518_v36  ;;  %v727_v61 = vmul.f32 %v1032_v35, %v1504_v53  ;;  %v736_v62 = vmul.f32 %v1504_v53, %v568_v19  ;;  %v737_v63 = vmul.f32 %v1047_v8, %v1504_v53 }
 0x125   : > { %v738_v1 = vmul.f32 %v1504_v53, %v578_v23  ;;  %v739_v2 = vmul.f32 %v1050_v22, %v1504_v53  ;;  %v740_v3 = vmul.f32 %v1504_v53, %v588_v27  ;;  %v741_v6 = vmul.f32 %v1053_v26, %v1504_v53 }
 0x126   : > { %v742_v7 = vmul.f32 %v1504_v53, %v598_v31  ;;  %v743_v9 = vmul.f32 %v1056_v30, %v1504_v53  ;;  %v744_v10 = vmul.f32 %v1504_v53, %v608_v34  ;;  %v745_v11 = vmul.f32 %v1059_v33, %v1504_v53 }
 0x127   : > { %v746_v13 = vmul.f32 %v1504_v53, %v618_v38  ;;  %v747_v14 = vmul.f32 %v1062_v37, %v1504_v53  ;;  %v748_v15 = vmul.f32 %v1504_v53, %v628_v42  ;;  %v749_v16 = vmul.f32 %v1065_v41, %v1504_v53 }
 0x128   : > { %v729_v17 = vmul.f32 %v1035_v39, %v1504_v53  ;;  %v757_v18 = vadd.f32 %v1526_v0, %v718_v54  ;;  %v758_v8 = vadd.f32 %v1526_v0, %v719_v55  ;;  %v759_v19 = vadd.f32 %v1526_v0, %v720_v56 }
 0x129   : > { %v760_v20 = vadd.f32 %v1526_v0, %v721_v57  ;;  %v761_v21 = vadd.f32 %v1526_v0, %v722_v58  ;;  %v762_v22 = vadd.f32 %v1526_v0, %v723_v59  ;;  %v763_v23 = vadd.f32 %v1526_v0, %v724_v60 }
 0x12a   : > { %v768_v24 = vadd.f32 %v1526_v0, %v729_v17  ;;  %v764_v25 = vadd.f32 %v1526_v0, %v725_v4  ;;  %v765_v26 = vadd.f32 %v1526_v0, %v726_v5  ;;  %v766_v27 = vadd.f32 %v1526_v0, %v727_v61  ;;  %789 = vst [vmem:[%s1557_s24] sm:$0xff] %v757_v18 }
 0x12b   : > { %790 = vst [vmem:[%s1557_s24 + $0x8] sm:$0xff] %v758_v8  ;;  %791 = vst [vmem:[%s1557_s24 + $0x10] sm:$0xff] %v759_v19  ;;  %v775_v28 = vadd.f32 %v1526_v0, %v736_v62  ;;  %v776_v29 = vadd.f32 %v1526_v0, %v737_v63  ;;  %v777_v30 = vadd.f32 %v1526_v0, %v738_v1 }
 0x12c   : > { %v778_v31 = vadd.f32 %v1526_v0, %v739_v2  ;;  %792 = vst [vmem:[%s1557_s24 + $0x18] sm:$0xff] %v760_v20  ;;  %793 = vst [vmem:[%s1557_s24 + $0x20] sm:$0xff] %v761_v21  ;;  %v779_v32 = vadd.f32 %v1526_v0, %v740_v3  ;;  %v780_v12 = vadd.f32 %v1526_v0, %v741_v6 }
 0x12d   : > { %794 = vst [vmem:[%s1557_s24 + $0x28] sm:$0xff] %v762_v22  ;;  %795 = vst [vmem:[%s1557_s24 + $0x30] sm:$0xff] %v763_v23  ;;  %v781_v33 = vadd.f32 %v1526_v0, %v742_v7  ;;  %v782_v34 = vadd.f32 %v1526_v0, %v743_v9  ;;  %v783_v35 = vadd.f32 %v1526_v0, %v744_v10 }
 0x12e   : > { %800 = vst [vmem:[%s1557_s24 + $0x58] sm:$0xff] %v768_v24  ;;  %796 = vst [vmem:[%s1557_s24 + $0x38] sm:$0xff] %v764_v25  ;;  %v784_v36 = vadd.f32 %v1526_v0, %v745_v11  ;;  %v785_v37 = vadd.f32 %v1526_v0, %v746_v13  ;;  %v786_v38 = vadd.f32 %v1526_v0, %v747_v14 }
 0x12f   : > { %797 = vst [vmem:[%s1557_s24 + $0x40] sm:$0xff] %v765_v26  ;;  %798 = vst [vmem:[%s1557_s24 + $0x48] sm:$0xff] %v766_v27  ;;  %v787_v39 = vadd.f32 %v1526_v0, %v748_v15  ;;  %v788_v41 = vadd.f32 %v1526_v0, %v749_v16  ;;  %v728_v42 = vmul.f32 %v1504_v53, %v1488_v40 }
 0x130   : > { %807 = vst [vmem:[%s1557_s24 + $0x90] sm:$0xff] %v775_v28  ;;  %808 = vst [vmem:[%s1557_s24 + $0x98] sm:$0xff] %v776_v29  ;;  %v731_v45 = vmul.f32 %v1490_v43, %v1504_v53  ;;  %v730_v46 = vmul.f32 %v1504_v53, %v1492_v44  ;;  %v733_v47 = vmul.f32 %v1494_v48, %v1504_v53 }
 0x131   : > { %809 = vst [vmem:[%s1557_s24 + $0xa0] sm:$0xff] %v777_v30  ;;  %810 = vst [vmem:[%s1557_s24 + $0xa8] sm:$0xff] %v778_v31  ;;  %v732_v52 = vmul.f32 %v1504_v53, %v1496_v49  ;;  %v735_v40 = vmul.f32 %v1498_v50, %v1504_v53  ;;  %v767_v43 = vadd.f32 %v1526_v0, %v728_v42 }
 0x132   : > { %811 = vst [vmem:[%s1557_s24 + $0xb0] sm:$0xff] %v779_v32  ;;  %812 = vst [vmem:[%s1557_s24 + $0xb8] sm:$0xff] %v780_v12  ;;  %v770_v44 = vadd.f32 %v1526_v0, %v731_v45  ;;  %v734_v48 = vmul.f32 %v1504_v53, %v1500_v51  ;;  %v769_v49 = vadd.f32 %v1526_v0, %v730_v46 }
 0x133   : > { %813 = vst [vmem:[%s1557_s24 + $0xc0] sm:$0xff] %v781_v33  ;;  %814 = vst [vmem:[%s1557_s24 + $0xc8] sm:$0xff] %v782_v34  ;;  %v772_v50 = vadd.f32 %v1526_v0, %v733_v47  ;;  %v771_v54 = vadd.f32 %v1526_v0, %v732_v52  ;;  %v774_v55 = vadd.f32 %v1526_v0, %v735_v40 }
 0x134   : > { %815 = vst [vmem:[%s1557_s24 + $0xd0] sm:$0xff] %v783_v35  ;;  %816 = vst [vmem:[%s1557_s24 + $0xd8] sm:$0xff] %v784_v36  ;;  %v773_v56 = vadd.f32 %v1526_v0, %v734_v48 }
 0x135   : > { %817 = vst [vmem:[%s1557_s24 + $0xe0] sm:$0xff] %v785_v37  ;;  %818 = vst [vmem:[%s1557_s24 + $0xe8] sm:$0xff] %v786_v38 }
 0x136   : > { %819 = vst [vmem:[%s1557_s24 + $0xf0] sm:$0xff] %v787_v39  ;;  %820 = vst [vmem:[%s1557_s24 + $0xf8] sm:$0xff] %v788_v41 }
 0x137   : > { %799 = vst [vmem:[%s1557_s24 + $0x50] sm:$0xff] %v767_v43  ;;  %802 = vst [vmem:[%s1557_s24 + $0x68] sm:$0xff] %v770_v44 }
 0x138   : > { %801 = vst [vmem:[%s1557_s24 + $0x60] sm:$0xff] %v769_v49  ;;  %804 = vst [vmem:[%s1557_s24 + $0x78] sm:$0xff] %v772_v50 }
 0x139   : > { %803 = vst [vmem:[%s1557_s24 + $0x70] sm:$0xff] %v771_v54  ;;  %806 = vst [vmem:[%s1557_s24 + $0x88] sm:$0xff] %v774_v55 }
 0x13a   : > { %805 = vst [vmem:[%s1557_s24 + $0x80] sm:$0xff] %v773_v56 }
 0x13b   : > { %1173 = shalt.err (!%p1170_p7)
}
 0x13c   : > { %s1174_s10 = scalar_lea.hbm %s1613_s5, 4096  ;;  %s1178_s19 = scalar_lea.hbm %s1693_s4, 32768 }
 0x13d   : > { %p1175_p9 = scmp.ne.s32.totalorder %s1613_s5, %s1174_s10  ;;  %p1179_p12 = scmp.lt.u32.totalorder %s1613_s5, %s1693_s4 }
 0x13e   : > { %p1180_p13 = scmp.lt.u32.totalorder %s1178_s19, %s1174_s10  ;;  %p1182_p1 = scmp.lt.u32.totalorder %s1174_s10, %s1613_s5 }
 0x13f   : > { %p1176_p10 = pnand %p1175_p9, %p1338_p3 }
 0x140   : > { %p1181_p0 = por %p1180_p13, %p1179_p12 }
 0x141   : > { %p1177_p11 = pneg %p1176_p10 }
 0x142   : > { %p1183_p2 = por %p1182_p1, %p1181_p0 }
 0x144   : > { %p1184_p4 = pnand %p1183_p2, %p1177_p11 }
 0x146   : > { %1187 = shalt.err (!%p1184_p4)
}
 0x147   : > { %s1260_s30 = smov 128   ;;  %s1261_s18 = smov 8  }
 0x148   : > { %1082 = dma.vmem_to_hbm [thread:$0]  (%p1338_p3), %s1625_s27, 4096, %s1613_s5, %s1637_s6, %s1260_s30, %s1260_s30, %s1261_s18  }
 0x149 PF: > { %p1088_p5 = scmp.ge.s32.totalorder %s1254_s22, 2  ;;  %s852_s8 = sand.u32 1, %s1226_s15  }
 0x14a   : > { %s853_s9 = scalar_lea.sflag [#allocation3], %s852_s8 }
 0x14b   : > { %p1085_p6 = pnand %p1088_p5, %p1347_p8 }
 0x14d   : > { %1221 = dma.done.wait (!%p1085_p6), %s853_s9, 4096  }
 0x14e   : > { %1223 = vsyncadd (!%p1085_p6), %s853_s9, 4294963200  ;;  %s17_s22 = sadd.s32 1, %s1254_s22   ;;  %s1696_s15 = smov %s1230_s16 }
 0x14f   : > { %p14_p7 = scmp.ge.s32.totalorder %s17_s22, 10   ;;  %s1697_s16 = smov %s1234_s17 }
 0x150   : > { %s1698_s17 = smov %s1356_s7  ;;  %s1699_s18 = smov %s1246_s20 }
 0x151   : > { %s1700_s19 = smov %s1250_s21  ;;  %s1701_s20 = smov %s1704_s25 }
 0x152   : > { %s1702_s21 = smov %s1708_s26  ;;  %16 = sbr.rel (!%p14_p7) target bundleno = 5 (0x5), region = 74 }
 0x159   :  { %858 = vsyncpa [#allocation3], 1 }
 0x15a   :  { %860 = vsyncpa [#allocation3 + $0x1], 1 }

</bundles_post_ra>
